<compile_context>
chip_gen: v7x
topology: tpu7x:2x2x1
jax: 0.10.0
libtpu: 0.0.40
codegen_flags: <defaults>
</compile_context>

<pallas_src>
import math

import jax
import jax.numpy as jnp
import numpy as np
from jax.experimental import pallas as pl
from jax.experimental.pallas import tpu as pltpu


def make_cross_modal_attention_kernel(head_dim: int):
    scale = 1.0 / math.sqrt(head_dim)

    def kernel(q_ref, k_ref, v_ref,
               wq_ref, bq_ref, wk_ref, bk_ref, wv_ref, bv_ref,
               wo_ref, bo_ref,
               out_ref, attn_ref,
               acc_ref):
        h = pl.program_id(1)

        q = q_ref[0]          # (N_q, D)
        k = k_ref[0]          # (N_k, D)
        v = v_ref[0]          # (N_k, D)

        # Per-head projections: dense (N, D) @ (D, hd) MXU matmuls, no slicing.
        Qh = jnp.dot(q, wq_ref[0], preferred_element_type=jnp.float32) + bq_ref[0]
        Kh = jnp.dot(k, wk_ref[0], preferred_element_type=jnp.float32) + bk_ref[0]
        Vh = jnp.dot(v, wv_ref[0], preferred_element_type=jnp.float32) + bv_ref[0]

        # Scores via NT dot_general (contract last dims) -> no explicit K^T.
        scores = jax.lax.dot_general(
            Qh, Kh, (((1,), (1,)), ((), ())),
            preferred_element_type=jnp.float32) * scale        # (N_q, N_k)

        m = jnp.max(scores, axis=-1, keepdims=True)
        e = jnp.exp(scores - m)
        s = jnp.sum(e, axis=-1, keepdims=True)
        p = e * pl.reciprocal(s, approx=True)                  # softmax (N_q, N_k)

        # Lane-dense store of this head's attention weights.
        attn_ref[0, 0] = p

        pv = jnp.dot(p, Vh, preferred_element_type=jnp.float32)       # (N_q, hd)
        contrib = jnp.dot(pv, wo_ref[0], preferred_element_type=jnp.float32)  # (N_q, D)

        @pl.when(h == 0)
        def _():
            acc_ref[...] = jnp.zeros_like(acc_ref)

        acc_ref[...] += contrib

        @pl.when(h == pl.num_programs(1) - 1)
        def _():
            out_ref[0] = (acc_ref[...] + bo_ref[...]).astype(out_ref.dtype)

    return kernel


def prepare_params(params, num_heads):
    """One-time repack of PyTorch-layout (out, in) Linear params into per-head tiles."""
    wq, bq, wk, bk, wv, bv, wo, bo = params
    D = wq.shape[0]
    hd = D // num_heads

    def qkv_w(w):   # (D, D) (out, in) -> (H, D, hd) so that x @ w_h[h] == x @ w.T[:, h-block]
        return jnp.transpose(w.reshape(num_heads, hd, D), (0, 2, 1))

    def qkv_b(b):   # (D,) -> (H, 1, hd)
        return b.reshape(num_heads, 1, hd)

    wo_h = jnp.transpose(wo, (1, 0)).reshape(num_heads, hd, D)   # (H, hd, D)
    bo_r = bo.reshape(1, D)

    return (qkv_w(wq), qkv_b(bq),
            qkv_w(wk), qkv_b(bk),
            qkv_w(wv), qkv_b(bv),
            wo_h, bo_r)


def cross_modal_attention(query, key, value, prepared_params, num_heads):
    """Fused cross-attention. Returns (out (B,N_q,D), attn_weights (B,H,N_q,N_k))."""
    B, N_q, D = query.shape
    _, N_k, _ = key.shape
    head_dim = D // num_heads
    assert head_dim * num_heads == D

    wq_h, bq_h, wk_h, bk_h, wv_h, bv_h, wo_h, bo_r = prepared_params
    kernel = make_cross_modal_attention_kernel(head_dim)

    # Per-head weight/bias tiles, indexed by the head grid axis.
    w_in_spec = pl.BlockSpec((1, D, head_dim), lambda b, h: (h, 0, 0))
    b_in_spec = pl.BlockSpec((1, 1, head_dim), lambda b, h: (h, 0, 0))
    wo_spec = pl.BlockSpec((1, head_dim, D), lambda b, h: (h, 0, 0))
    bo_spec = pl.BlockSpec((1, D), lambda b, h: (0, 0))

    out_shapes = (
        jax.ShapeDtypeStruct((B, N_q, D), query.dtype),
        jax.ShapeDtypeStruct((B, num_heads, N_q, N_k), jnp.float32),
    )

    return pl.pallas_call(
        kernel,
        out_shape=out_shapes,
        grid_spec=pltpu.PrefetchScalarGridSpec(
            num_scalar_prefetch=0,
            grid=(B, num_heads),
            in_specs=[
                pl.BlockSpec((1, N_q, D), lambda b, h: (b, 0, 0)),   # query
                pl.BlockSpec((1, N_k, D), lambda b, h: (b, 0, 0)),   # key
                pl.BlockSpec((1, N_k, D), lambda b, h: (b, 0, 0)),   # value
                w_in_spec, b_in_spec,   # q_proj (per-head tile)
                w_in_spec, b_in_spec,   # k_proj
                w_in_spec, b_in_spec,   # v_proj
                wo_spec, bo_spec,       # out_proj
            ],
            out_specs=[
                pl.BlockSpec((1, N_q, D), lambda b, h: (b, 0, 0)),
                pl.BlockSpec((1, 1, N_q, N_k), lambda b, h: (b, h, 0, 0)),
            ],
            scratch_shapes=[pltpu.VMEM((N_q, D), jnp.float32)],
        ),
        compiler_params=pltpu.CompilerParams(
            dimension_semantics=("parallel", "arbitrary"),
            vmem_limit_bytes=32 * 1024 * 1024),
    )(query, key, value,
      wq_h, bq_h, wk_h, bk_h, wv_h, bv_h, wo_h, bo_r)


def reference(query, key, value, params, num_heads):
    """Pure-JAX reference matching the PyTorch forward (eval mode, no mask)."""
    B, N_q, D = query.shape
    _, N_k, _ = key.shape
    hd = D // num_heads
    wq, bq, wk, bk, wv, bv, wo, bo = params

    def proj(x, w, b):
        return x @ w.T + b

    Q = proj(query, wq, bq).reshape(B, N_q, num_heads, hd).transpose(0, 2, 1, 3)
    K = proj(key, wk, bk).reshape(B, N_k, num_heads, hd).transpose(0, 2, 1, 3)
    V = proj(value, wv, bv).reshape(B, N_k, num_heads, hd).transpose(0, 2, 1, 3)
    scores = jnp.einsum("bhqd,bhkd->bhqk", Q, K) / math.sqrt(hd)
    attn = jax.nn.softmax(scores, axis=-1)
    out = jnp.einsum("bhqk,bhkd->bhqd", attn, V)
    out = out.transpose(0, 2, 1, 3).reshape(B, N_q, D)
    out = out @ wo.T + bo
    return out, attn


def init_params(key, embed_dim):
    """Deterministic init mimicking nn.Linear default (uniform +/- 1/sqrt(in))."""
    bound = 1.0 / math.sqrt(embed_dim)
    keys = jax.random.split(key, 8)
    shapes = [(embed_dim, embed_dim), (embed_dim,)] * 4  # wq,bq,wk,bk,wv,bv,wo,bo
    return tuple(
        jax.random.uniform(k, s, jnp.float32, -bound, bound)
        for k, s in zip(keys, shapes)
    )


if __name__ == "__main__":
    B, N_q, N_k = 2, 8, 8
    embed_dim, num_heads = 32, 4

    root = jax.random.PRNGKey(0)
    kq, kk, kv, kp = jax.random.split(root, 4)
    query = jax.random.normal(kq, (B, N_q, embed_dim), jnp.float32)
    key = jax.random.normal(kk, (B, N_k, embed_dim), jnp.float32)
    value = jax.random.normal(kv, (B, N_k, embed_dim), jnp.float32)
    params = init_params(kp, embed_dim)
    prepared = prepare_params(params, num_heads)   # one-time weight repack

    out, attn = cross_modal_attention(query, key, value, prepared, num_heads)
    out = jax.block_until_ready(out)
    attn = jax.block_until_ready(attn)

    out_ref, attn_ref = reference(query, key, value, params, num_heads)
    # Tolerance accounts for the approximate EUP reciprocal in the softmax
    # normalization (pl.reciprocal(approx=True)); set approx=False for exact parity.
    np.testing.assert_allclose(np.asarray(out), np.asarray(out_ref),
                               rtol=1e-2, atol=1e-2)
    np.testing.assert_allclose(np.asarray(attn), np.asarray(attn_ref),
                               rtol=1e-2, atol=1e-2)

    print("KERNEL_OK")
</pallas_src>

<mosaic_0001>
module attributes {stable_mosaic.version = 11 : i64} {
  func.func @kernel(%arg0: i32, %arg1: i32, %arg2: memref<1x8x32xf32, #tpu.memory_space<vmem>>, %arg3: memref<1x8x32xf32, #tpu.memory_space<vmem>>, %arg4: memref<1x8x32xf32, #tpu.memory_space<vmem>>, %arg5: memref<1x32x8xf32, #tpu.memory_space<vmem>>, %arg6: memref<1x1x8xf32, #tpu.memory_space<vmem>>, %arg7: memref<1x32x8xf32, #tpu.memory_space<vmem>>, %arg8: memref<1x1x8xf32, #tpu.memory_space<vmem>>, %arg9: memref<1x32x8xf32, #tpu.memory_space<vmem>>, %arg10: memref<1x1x8xf32, #tpu.memory_space<vmem>>, %arg11: memref<1x8x32xf32, #tpu.memory_space<vmem>>, %arg12: memref<1x32xf32, #tpu.memory_space<vmem>>, %arg13: memref<1x8x32xf32, #tpu.memory_space<vmem>>, %arg14: memref<1x1x8x8xf32, #tpu.memory_space<vmem>>, %arg15: memref<8x32xf32, #tpu.memory_space<vmem>>) attributes {dimension_semantics = [#tpu.dimension_semantics<parallel>, #tpu.dimension_semantics<arbitrary>], iteration_bounds = array<i64: 2, 4>, scalar_prefetch = 0 : i64, scratch_operands = 1 : i64, tpu.core_type = #tpu.core_type<tc>, window_params = [{transform_indices = @transform_0, window_bounds = array<i64: 1, 8, 32>}, {transform_indices = @transform_1, window_bounds = array<i64: 1, 8, 32>}, {transform_indices = @transform_2, window_bounds = array<i64: 1, 8, 32>}, {transform_indices = @transform_3, window_bounds = array<i64: 1, 32, 8>}, {transform_indices = @transform_4, window_bounds = array<i64: 1, 1, 8>}, {transform_indices = @transform_5, window_bounds = array<i64: 1, 32, 8>}, {transform_indices = @transform_6, window_bounds = array<i64: 1, 1, 8>}, {transform_indices = @transform_7, window_bounds = array<i64: 1, 32, 8>}, {transform_indices = @transform_8, window_bounds = array<i64: 1, 1, 8>}, {transform_indices = @transform_9, window_bounds = array<i64: 1, 8, 32>}, {pipeline_mode = #tpu.pipeline_mode<synchronous>, transform_indices = @transform_10, window_bounds = array<i64: 1, 32>}, {transform_indices = @transform_11, window_bounds = array<i64: 1, 8, 32>}, {transform_indices = @transform_12, window_bounds = array<i64: 1, 1, 8, 8>}]} {
    %c0 = arith.constant 0 : index
    %c0_0 = arith.constant 0 : index
    %c0_1 = arith.constant 0 : index
    %0 = vector.load %arg2[%c0, %c0_0, %c0_1] : memref<1x8x32xf32, #tpu.memory_space<vmem>>, vector<1x8x32xf32>
    %1 = vector.shape_cast %0 : vector<1x8x32xf32> to vector<8x32xf32>
    %c0_2 = arith.constant 0 : index
    %c0_3 = arith.constant 0 : index
    %c0_4 = arith.constant 0 : index
    %2 = vector.load %arg3[%c0_2, %c0_3, %c0_4] : memref<1x8x32xf32, #tpu.memory_space<vmem>>, vector<1x8x32xf32>
    %3 = vector.shape_cast %2 : vector<1x8x32xf32> to vector<8x32xf32>
    %c0_5 = arith.constant 0 : index
    %c0_6 = arith.constant 0 : index
    %c0_7 = arith.constant 0 : index
    %4 = vector.load %arg4[%c0_5, %c0_6, %c0_7] : memref<1x8x32xf32, #tpu.memory_space<vmem>>, vector<1x8x32xf32>
    %5 = vector.shape_cast %4 : vector<1x8x32xf32> to vector<8x32xf32>
    %c0_8 = arith.constant 0 : index
    %c0_9 = arith.constant 0 : index
    %c0_10 = arith.constant 0 : index
    %6 = vector.load %arg5[%c0_8, %c0_9, %c0_10] : memref<1x32x8xf32, #tpu.memory_space<vmem>>, vector<1x32x8xf32>
    %7 = vector.shape_cast %6 : vector<1x32x8xf32> to vector<32x8xf32>
    %cst = arith.constant dense<0.000000e+00> : vector<8x8xf32>
    %8 = tpu.matmul %1, %7, %cst {dimension_numbers = #tpu.dot_dimension_numbers<[1], [0], [0], [1], [0, 0, 1, 1], [], []>} : vector<8x32xf32>, vector<32x8xf32>, vector<8x8xf32> -> vector<8x8xf32>
    %c0_11 = arith.constant 0 : index
    %c0_12 = arith.constant 0 : index
    %c0_13 = arith.constant 0 : index
    %9 = vector.load %arg6[%c0_11, %c0_12, %c0_13] : memref<1x1x8xf32, #tpu.memory_space<vmem>>, vector<1x1x8xf32>
    %10 = vector.shape_cast %9 : vector<1x1x8xf32> to vector<1x8xf32>
    %11 = vector.broadcast %10 : vector<1x8xf32> to vector<8x8xf32>
    %12 = arith.addf %8, %11 : vector<8x8xf32>
    %c0_14 = arith.constant 0 : index
    %c0_15 = arith.constant 0 : index
    %c0_16 = arith.constant 0 : index
    %13 = vector.load %arg7[%c0_14, %c0_15, %c0_16] : memref<1x32x8xf32, #tpu.memory_space<vmem>>, vector<1x32x8xf32>
    %14 = vector.shape_cast %13 : vector<1x32x8xf32> to vector<32x8xf32>
    %cst_17 = arith.constant dense<0.000000e+00> : vector<8x8xf32>
    %15 = tpu.matmul %3, %14, %cst_17 {dimension_numbers = #tpu.dot_dimension_numbers<[1], [0], [0], [1], [0, 0, 1, 1], [], []>} : vector<8x32xf32>, vector<32x8xf32>, vector<8x8xf32> -> vector<8x8xf32>
    %c0_18 = arith.constant 0 : index
    %c0_19 = arith.constant 0 : index
    %c0_20 = arith.constant 0 : index
    %16 = vector.load %arg8[%c0_18, %c0_19, %c0_20] : memref<1x1x8xf32, #tpu.memory_space<vmem>>, vector<1x1x8xf32>
    %17 = vector.shape_cast %16 : vector<1x1x8xf32> to vector<1x8xf32>
    %18 = vector.broadcast %17 : vector<1x8xf32> to vector<8x8xf32>
    %19 = arith.addf %15, %18 : vector<8x8xf32>
    %c0_21 = arith.constant 0 : index
    %c0_22 = arith.constant 0 : index
    %c0_23 = arith.constant 0 : index
    %20 = vector.load %arg9[%c0_21, %c0_22, %c0_23] : memref<1x32x8xf32, #tpu.memory_space<vmem>>, vector<1x32x8xf32>
    %21 = vector.shape_cast %20 : vector<1x32x8xf32> to vector<32x8xf32>
    %cst_24 = arith.constant dense<0.000000e+00> : vector<8x8xf32>
    %22 = tpu.matmul %5, %21, %cst_24 {dimension_numbers = #tpu.dot_dimension_numbers<[1], [0], [0], [1], [0, 0, 1, 1], [], []>} : vector<8x32xf32>, vector<32x8xf32>, vector<8x8xf32> -> vector<8x8xf32>
    %c0_25 = arith.constant 0 : index
    %c0_26 = arith.constant 0 : index
    %c0_27 = arith.constant 0 : index
    %23 = vector.load %arg10[%c0_25, %c0_26, %c0_27] : memref<1x1x8xf32, #tpu.memory_space<vmem>>, vector<1x1x8xf32>
    %24 = vector.shape_cast %23 : vector<1x1x8xf32> to vector<1x8xf32>
    %25 = vector.broadcast %24 : vector<1x8xf32> to vector<8x8xf32>
    %26 = arith.addf %22, %25 : vector<8x8xf32>
    %cst_28 = arith.constant dense<0.000000e+00> : vector<8x8xf32>
    %27 = tpu.matmul %12, %19, %cst_28 {dimension_numbers = #tpu.dot_dimension_numbers<[1], [1], [0], [0], [0, 0, 1, 0], [], []>} : vector<8x8xf32>, vector<8x8xf32>, vector<8x8xf32> -> vector<8x8xf32>
    %cst_29 = arith.constant 0.353553385 : f32
    %28 = vector.broadcast %cst_29 : f32 to vector<8x8xf32>
    %29 = arith.mulf %27, %28 : vector<8x8xf32>
    %cst_30 = arith.constant dense<0xFF800000> : vector<8xf32>
    %30 = vector.multi_reduction <maximumf>, %29, %cst_30 [1] : vector<8x8xf32> to vector<8xf32>
    %31 = vector.shape_cast %30 : vector<8xf32> to vector<8x1xf32>
    %32 = vector.broadcast %31 : vector<8x1xf32> to vector<8x8xf32>
    %33 = arith.subf %29, %32 : vector<8x8xf32>
    %34 = math.exp %33 : vector<8x8xf32>
    %cst_31 = arith.constant dense<0.000000e+00> : vector<8xf32>
    %35 = vector.multi_reduction <add>, %34, %cst_31 [1] : vector<8x8xf32> to vector<8xf32>
    %36 = vector.shape_cast %35 : vector<8xf32> to vector<8x1xf32>
    %37 = tpu.reciprocal %36 {approx = true} : vector<8x1xf32> -> vector<8x1xf32>
    %38 = vector.broadcast %37 : vector<8x1xf32> to vector<8x8xf32>
    %39 = arith.mulf %34, %38 : vector<8x8xf32>
    %c0_32 = arith.constant 0 : index
    %c0_33 = arith.constant 0 : index
    %c0_34 = arith.constant 0 : index
    %c0_35 = arith.constant 0 : index
    %40 = vector.load %arg14[%c0_32, %c0_33, %c0_34, %c0_35] : memref<1x1x8x8xf32, #tpu.memory_space<vmem>>, vector<1x1x8x8xf32>
    %41 = vector.shape_cast %40 : vector<1x1x8x8xf32> to vector<8x8xf32>
    %42 = vector.shape_cast %39 : vector<8x8xf32> to vector<1x1x8x8xf32>
    tpu.vector_store %arg14[%c0_32, %c0_33, %c0_34, %c0_35], %42 {strides = array<i32>} : memref<1x1x8x8xf32, #tpu.memory_space<vmem>>, vector<1x1x8x8xf32>,
    %cst_36 = arith.constant dense<0.000000e+00> : vector<8x8xf32>
    %43 = tpu.matmul %39, %26, %cst_36 {dimension_numbers = #tpu.dot_dimension_numbers<[1], [0], [0], [1], [0, 0, 1, 1], [], []>} : vector<8x8xf32>, vector<8x8xf32>, vector<8x8xf32> -> vector<8x8xf32>
    %c0_37 = arith.constant 0 : index
    %c0_38 = arith.constant 0 : index
    %c0_39 = arith.constant 0 : index
    %44 = vector.load %arg11[%c0_37, %c0_38, %c0_39] : memref<1x8x32xf32, #tpu.memory_space<vmem>>, vector<1x8x32xf32>
    %45 = vector.shape_cast %44 : vector<1x8x32xf32> to vector<8x32xf32>
    %cst_40 = arith.constant dense<0.000000e+00> : vector<8x32xf32>
    %46 = tpu.matmul %43, %45, %cst_40 {dimension_numbers = #tpu.dot_dimension_numbers<[1], [0], [0], [1], [0, 0, 1, 1], [], []>} : vector<8x8xf32>, vector<8x32xf32>, vector<8x32xf32> -> vector<8x32xf32>
    %c0_i32 = arith.constant 0 : i32
    %47 = arith.cmpi eq, %arg1, %c0_i32 : i32
    %48 = arith.extui %47 : i1 to i32
    %c0_i32_41 = arith.constant 0 : i32
    %49 = arith.cmpi ne, %48, %c0_i32_41 : i32
    scf.if %49 {
      %cst_47 = arith.constant 0.000000e+00 : f32
      %56 = vector.broadcast %cst_47 : f32 to vector<8x32xf32>
      %c0_48 = arith.constant 0 : index
      %c0_49 = arith.constant 0 : index
      %57 = vector.load %arg15[%c0_48, %c0_49] : memref<8x32xf32, #tpu.memory_space<vmem>>, vector<8x32xf32>
      tpu.vector_store %arg15[%c0_48, %c0_49], %56 {strides = array<i32>} : memref<8x32xf32, #tpu.memory_space<vmem>>, vector<8x32xf32>,
    } else {
    }
    %c0_42 = arith.constant 0 : index
    %c0_43 = arith.constant 0 : index
    %50 = vector.load %arg15[%c0_42, %c0_43] : memref<8x32xf32, #tpu.memory_space<vmem>>, vector<8x32xf32>
    %51 = arith.addf %50, %46 : vector<8x32xf32>
    %c0_44 = arith.constant 0 : index
    %c0_45 = arith.constant 0 : index
    %52 = vector.load %arg15[%c0_44, %c0_45] : memref<8x32xf32, #tpu.memory_space<vmem>>, vector<8x32xf32>
    tpu.vector_store %arg15[%c0_44, %c0_45], %51 {strides = array<i32>} : memref<8x32xf32, #tpu.memory_space<vmem>>, vector<8x32xf32>,
    %c3_i32 = arith.constant 3 : i32
    %53 = arith.cmpi eq, %arg1, %c3_i32 : i32
    %54 = arith.extui %53 : i1 to i32
    %c0_i32_46 = arith.constant 0 : i32
    %55 = arith.cmpi ne, %54, %c0_i32_46 : i32
    scf.if %55 {
      %c0_47 = arith.constant 0 : index
      %c0_48 = arith.constant 0 : index
      %56 = vector.load %arg15[%c0_47, %c0_48] : memref<8x32xf32, #tpu.memory_space<vmem>>, vector<8x32xf32>
      %c0_49 = arith.constant 0 : index
      %c0_50 = arith.constant 0 : index
      %57 = vector.load %arg12[%c0_49, %c0_50] : memref<1x32xf32, #tpu.memory_space<vmem>>, vector<1x32xf32>
      %58 = vector.broadcast %57 : vector<1x32xf32> to vector<8x32xf32>
      %59 = arith.addf %56, %58 : vector<8x32xf32>
      %c0_51 = arith.constant 0 : index
      %c0_52 = arith.constant 0 : index
      %c0_53 = arith.constant 0 : index
      %60 = vector.load %arg13[%c0_51, %c0_52, %c0_53] : memref<1x8x32xf32, #tpu.memory_space<vmem>>, vector<1x8x32xf32>
      %61 = vector.shape_cast %60 : vector<1x8x32xf32> to vector<8x32xf32>
      %62 = vector.shape_cast %59 : vector<8x32xf32> to vector<1x8x32xf32>
      tpu.vector_store %arg13[%c0_51, %c0_52, %c0_53], %62 {strides = array<i32>} : memref<1x8x32xf32, #tpu.memory_space<vmem>>, vector<1x8x32xf32>,
    } else {
    }
    return
  }
  func.func @transform_0(%arg0: i32, %arg1: i32) -> (i32, i32, i32) {
    %c0_i32 = arith.constant 0 : i32
    %c0_i32_0 = arith.constant 0 : i32
    %c0_i32_1 = arith.constant 0 : i32
    return %arg0, %c0_i32, %c0_i32_0 : i32, i32, i32
  }
  func.func @transform_1(%arg0: i32, %arg1: i32) -> (i32, i32, i32) {
    %c0_i32 = arith.constant 0 : i32
    %c0_i32_0 = arith.constant 0 : i32
    %c0_i32_1 = arith.constant 0 : i32
    return %arg0, %c0_i32, %c0_i32_0 : i32, i32, i32
  }
  func.func @transform_2(%arg0: i32, %arg1: i32) -> (i32, i32, i32) {
    %c0_i32 = arith.constant 0 : i32
    %c0_i32_0 = arith.constant 0 : i32
    %c0_i32_1 = arith.constant 0 : i32
    return %arg0, %c0_i32, %c0_i32_0 : i32, i32, i32
  }
  func.func @transform_3(%arg0: i32, %arg1: i32) -> (i32, i32, i32) {
    %c0_i32 = arith.constant 0 : i32
    %c0_i32_0 = arith.constant 0 : i32
    %c0_i32_1 = arith.constant 0 : i32
    return %arg1, %c0_i32, %c0_i32_0 : i32, i32, i32
  }
  func.func @transform_4(%arg0: i32, %arg1: i32) -> (i32, i32, i32) {
    %c0_i32 = arith.constant 0 : i32
    %c0_i32_0 = arith.constant 0 : i32
    %c0_i32_1 = arith.constant 0 : i32
    return %arg1, %c0_i32, %c0_i32_0 : i32, i32, i32
  }
  func.func @transform_5(%arg0: i32, %arg1: i32) -> (i32, i32, i32) {
    %c0_i32 = arith.constant 0 : i32
    %c0_i32_0 = arith.constant 0 : i32
    %c0_i32_1 = arith.constant 0 : i32
    return %arg1, %c0_i32, %c0_i32_0 : i32, i32, i32
  }
  func.func @transform_6(%arg0: i32, %arg1: i32) -> (i32, i32, i32) {
    %c0_i32 = arith.constant 0 : i32
    %c0_i32_0 = arith.constant 0 : i32
    %c0_i32_1 = arith.constant 0 : i32
    return %arg1, %c0_i32, %c0_i32_0 : i32, i32, i32
  }
  func.func @transform_7(%arg0: i32, %arg1: i32) -> (i32, i32, i32) {
    %c0_i32 = arith.constant 0 : i32
    %c0_i32_0 = arith.constant 0 : i32
    %c0_i32_1 = arith.constant 0 : i32
    return %arg1, %c0_i32, %c0_i32_0 : i32, i32, i32
  }
  func.func @transform_8(%arg0: i32, %arg1: i32) -> (i32, i32, i32) {
    %c0_i32 = arith.constant 0 : i32
    %c0_i32_0 = arith.constant 0 : i32
    %c0_i32_1 = arith.constant 0 : i32
    return %arg1, %c0_i32, %c0_i32_0 : i32, i32, i32
  }
  func.func @transform_9(%arg0: i32, %arg1: i32) -> (i32, i32, i32) {
    %c0_i32 = arith.constant 0 : i32
    %c0_i32_0 = arith.constant 0 : i32
    %c0_i32_1 = arith.constant 0 : i32
    return %arg1, %c0_i32, %c0_i32_0 : i32, i32, i32
  }
  func.func @transform_10(%arg0: i32, %arg1: i32) -> (i32, i32) {
    %c0_i32 = arith.constant 0 : i32
    %c0_i32_0 = arith.constant 0 : i32
    %c0_i32_1 = arith.constant 0 : i32
    return %c0_i32, %c0_i32_0 : i32, i32
  }
  func.func @transform_11(%arg0: i32, %arg1: i32) -> (i32, i32, i32) {
    %c0_i32 = arith.constant 0 : i32
    %c0_i32_0 = arith.constant 0 : i32
    %c0_i32_1 = arith.constant 0 : i32
    return %arg0, %c0_i32, %c0_i32_0 : i32, i32, i32
  }
  func.func @transform_12(%arg0: i32, %arg1: i32) -> (i32, i32, i32, i32) {
    %c0_i32 = arith.constant 0 : i32
    %c0_i32_0 = arith.constant 0 : i32
    %c0_i32_1 = arith.constant 0 : i32
    return %arg0, %arg1, %c0_i32, %c0_i32_0 : i32, i32, i32, i32
  }
}

</mosaic_0001>

<bundles_post_ra>
// kernel: tpu_custom_call.1
= control target key start
LH: loop header
LB: loop body
LE: loop exit
PB: predicated region body
PF: predicated region fallthrough
CT: control target
= control target key end

     0   :  { %s2111_s0 = inlined_call_operand.vmem [shape: f32[2,8,32], index: 0, kind: input, shape index: {}]   ;;  %s2112_s1 = inlined_call_operand.vmem [shape: f32[2,8,32], index: 1, kind: input, shape index: {}]   ;;  %s2113_s2 = inlined_call_operand.vmem [shape: f32[2,8,32], index: 2, kind: input, shape index: {}]   ;;  %s2114_s3 = inlined_call_operand.vmem [shape: f32[4,32,8], index: 3, kind: input, shape index: {}]   ;;  %s2115_s4 = inlined_call_operand.vmem [shape: f32[4,1,8], index: 4, kind: input, shape index: {}]   ;;  %s2116_s5 = inlined_call_operand.vmem [shape: f32[4,32,8], index: 5, kind: input, shape index: {}]   ;;  %s2117_s6 = inlined_call_operand.vmem [shape: f32[4,1,8], index: 6, kind: input, shape index: {}]   ;;  %s2118_s7 = inlined_call_operand.vmem [shape: f32[4,32,8], index: 7, kind: input, shape index: {}]   ;;  %s2119_s8 = inlined_call_operand.vmem [shape: f32[4,1,8], index: 8, kind: input, shape index: {}]   ;;  %s2120_s9 = inlined_call_operand.vmem [shape: f32[4,8,32], index: 9, kind: input, shape index: {}]   ;;  %s2121_s10 = inlined_call_operand.vmem [shape: f32[1,32], index: 10, kind: input, shape index: {}]   ;;  %s2122_s11 = inlined_call_operand.hbm [shape: f32[2,8,32], index: 11, kind: output, shape index: {0}]   ;;  %s2123_s12 = inlined_call_operand.hbm [shape: f32[2,4,8,8], index: 12, kind: output, shape index: {1}]  }
   0x1   :  { %2137 = sst [smem:[#allocation16_spill]] %s2111_s0 }
   0x2   :  { %2138 = sst [smem:[#allocation17_spill]] %s2112_s1 }
   0x3   :  { %2139 = sst [smem:[#allocation18_spill]] %s2113_s2 }
   0x4   :  { %2140 = sst [smem:[#allocation19_spill]] %s2114_s3 }
   0x5   :  { %2141 = sst [smem:[#allocation20_spill]] %s2115_s4 }
   0x6   :  { %2142 = sst [smem:[#allocation21_spill]] %s2116_s5 }
   0x7   :  { %2143 = sst [smem:[#allocation22_spill]] %s2120_s9 }
   0x8   :  { %2144 = sst [smem:[#allocation23_spill]] %s2121_s10 }
   0x9   :  { %2145 = sst [smem:[#allocation24_spill]] %s2122_s11 }
   0xa   :  { %2146 = sst [smem:[#allocation25_spill]] %s2123_s12 }
   0xb   :  { %18 = vsyncpa [#allocation4], 0 }
   0xc   :  { %20 = vsyncpa [#allocation4 + $0x1], 0 }
   0xd   :  { %21 = vsyncpa [#allocation6], 0 }
   0xe   :  { %23 = vsyncpa [#allocation6 + $0x1], 0  ;;  %s1797_s21 = smov 0   ;;  %s1799_s22 = smov 0  }
   0xf   :  { %s1801_s23 = smov 0   ;;  %s1803_s24 = smov 0  }
  0x10   :  { %s1805_s25 = smov 0   ;;  %s1807_s26 = smov 0  }
  0x11   :  { %s1809_s27 = smov 0   ;;  %s1811_s28 = smov 0  }
  0x12   :  { %s1813_s29 = smov 0   ;;  %s1815_s30 = smov 0  }
  0x13   :  { %s1817_s13 = smov 0  }
  0x14 LB: > { %2147 = sst [smem:[#allocation9_spill]] %s1696_s24  ;;  %s1339_s14 = sadd.s32 4294967295, %s1724_s13   ;;  %s1724_s13 = sphi %s1817_s13, %s29_s13   ;;  %s1720_s30 = sphi %s1815_s30, %s2180_s30   ;;  %s1716_s29 = sphi %s1813_s29, %s2187_s29   ;;  %s1712_s28 = sphi %s1811_s28, %s2178_s28   ;;  %s1708_s27 = sphi %s1809_s27, %s2177_s27   ;;  %s1704_s26 = sphi %s1807_s26, %s2186_s26   ;;  %s1700_s25 = sphi %s1805_s25, %s2185_s25   ;;  %s1696_s24 = sphi %s1803_s24, %s2184_s24   ;;  %s1692_s23 = sphi %s1801_s23, %s2183_s23   ;;  %s1688_s22 = sphi %s1799_s22, %s2182_s22   ;;  %s1684_s21 = sphi %s1797_s21, %s2181_s21  }
  0x15   : > { %2148 = sst [smem:[#allocation10_spill]] %s1716_s29  ;;  %s1340_s15 = sadd.s32 4294967294, %s1724_s13  }
  0x16   : > { %2149 = sst [smem:[#allocation11_spill]] %s1720_s30  ;;  %s38_s16 = sadd.s32 1, %s1716_s29 }
  0x17   : > { %s41_s17 = sadd.s32 1, %s1720_s30  ;;  %p39_p0 = scmp.ge.s32.totalorder %s38_s16, 4 }
  0x18   : > { %s329_s18 = sadd.s32 1, %s1704_s26  ;;  %p339_p1 = scmp.ne.s32.totalorder %s1704_s26, %s1700_s25 }
  0x19   : > { %p1859_p2 = scmp.eq.s32.totalorder %s1339_s14, 7  ;;  %s2189_s16 = smov (%p39_p0, %s38_s16), 0 }
  0x1a   : > { %2151 = sst [smem:[#allocation12_spill]] %s2189_s16  ;;  %s2191_s17 = smov (!%p39_p0, %s41_s17), %s1720_s30 }
  0x1b   : > { %p1868_p3 = por %p1859_p2, %p339_p1  ;;  %p345_p4 = scmp.ne.s32.totalorder %s1700_s25, %s1696_s24 }
  0x1c   : > { %p43_p5 = scmp.ge.s32.totalorder %s2191_s17, 2  ;;  %p1874_p6 = scmp.eq.s32.totalorder %s1340_s15, 7 }
  0x1d   : > { %s2152_s20 = scalar_select %p1868_p3, 1, 0 }
  0x1e   : > { %s353_s12 = ssub.s32 %s1716_s29, %s2189_s16  ;;  %s357_s11 = sadd.s32 1, %s1692_s23 }
  0x1f   : > { %2153 = sst [smem:[#allocation13_spill]] %s2152_s20  ;;  %s2193_s17 = smov (%p43_p5, %s2191_s17), 0 }
  0x20   : > { %2155 = sst [smem:[#allocation14_spill]] %s2193_s17  ;;  %p1885_p7 = por %p1874_p6, %p345_p4 }
  0x21   : > { %p367_p8 = scmp.ne.s32.totalorder %s1692_s23, %s1688_s22  ;;  %s326_s24 = ssub.s32 %s1720_s30, %s2193_s17 }
  0x22   : > { %p373_p9 = scmp.ne.s32.totalorder %s1688_s22, %s1684_s21  ;;  %p327_p10 = scmp.eq.s32.totalorder %s326_s24, 0 }
  0x23   : > { %s354_s15 = sor.u32 %s353_s12, %s326_s24  ;;  %p1897_p12 = por %p367_p8, %p1859_p2 }
  0x24   : > { %p355_p11 = scmp.eq.s32.totalorder %s354_s15, 0  ;;  %p1909_p13 = por %p373_p9, %p1874_p6 }
  0x25   : > { %s1902_s16 = scalar_select %p327_p10, %s1704_s26, %s329_s18  }
  0x26   : > { %s1905_s29 = scalar_select %p355_p11, %s1692_s23, %s357_s11  }
  0x27   : > { %2158 = sst [smem:[#allocation15_spill]] %s1902_s16  ;;  %p1343_p0 = scmp.ge.s32.totalorder %s1724_s13, 1 }
  0x28   : > { %s2159_s9 = scalar_select %p1909_p13, 1, 0 }
  0x29   : > { %p465_p1 = scmp.lt.s32.totalorder %s1724_s13, 9 }
  0x2b   : > { %p466_p4 = pnand %p1343_p0, %p465_p1 }
  0x2c   : > { %p559_p2 = scmp.lt.s32.totalorder (!%p466_p4), %s1708_s27, 3  ;;  %s2131_s12 = sand.u32 (!%p466_p4), 1, %s1700_s25   ;;  %v1726_v0 = vmov (!%p466_p4), 0.0|0.0   ;;  %vm1727_vm0 = vmmov (!%p466_p4), 0   ;;  %v1728_v1 = vmov (!%p466_p4), 0.0   ;;  %vm601_vm1 = vcmask (!%p466_p4), 261120  }
  0x2d   : > { %469 = sbr.rel (%p466_p4) target bundleno = 1304 (0x518), region = 64  ;;  %1454 = vmatprep.subr.bf16.mxu1 (!%p466_p4), %v1726_v0  ;;  %s1920_s11 = sshll.u32 (!%p466_p4), %s2131_s12, 3  ;;  %1448 = vmatprep.subr.bf16.mxu0 (!%p466_p4), %v1726_v0  ;;  %vm843_vm2 = vcmask (!%p466_p4), 64512  }
  0x2e   : > { %1419 = vmatprep.mubr.msk.f32.mxu1 (!%p466_p4), %vm1727_vm0, %v1728_v1  ;;  %1408 = vmatprep.mubr.msk.f32.mxu0 (!%p466_p4), %vm1727_vm0, %v1728_v1  ;;  %p547_p5 = scmp.lt.s32.totalorder (!%p466_p4), %s1712_s28, 1  ;;  %s2160_s5 = sld [smem:[#allocation21_spill]] (!%p466_p4) }
  0x2f   : > { %s2161_s3 = sld [smem:[#allocation19_spill]] (!%p466_p4)  ;;  %s2162_s1 = sld [smem:[#allocation17_spill]] (!%p466_p4) }
  0x30   : > { %s2163_s0 = sld [smem:[#allocation16_spill]] (!%p466_p4)  ;;  %s2164_s4 = sld [smem:[#allocation20_spill]] (!%p466_p4) }
  0x31   : > { %s2165_s2 = sld [smem:[#allocation18_spill]] (!%p466_p4)  ;;  %p1366_p6 = scmp.ne.s32.totalorder (!%p466_p4), %s1708_s27, 0 }
  0x34   : > { %s1924_s24 = scalar_select %p559_p2, %s1708_s27, 3 }
  0x35   : > { %s548_s16 = scalar_select %p547_p5, %s1712_s28, 1 }
  0x36   : > { %s1932_s18 = sshll.u32 %s1924_s24, 5  ;;  %s574_s12 = scalar_lea.vmem %s2117_s6, %s1924_s24  ;;  %v1729_v52 = vmov (!%p1366_p6), 0.0  }
  0x37   : > { %s571_s15 = scalar_lea.vmem %s2160_s5, %s1932_s18  ;;  %s563_s30 = scalar_lea.vmem %s2161_s3, %s1932_s18  ;;  %v1358_v16 = vld [vmem:[%s574_s12] ss:$0 sm:$0xff]  ;;  %1084 = vst.msk [vmem:[#allocation2] sm:$0xff] (!%p1366_p6), %vm601_vm1, %v1729_v52 }
  0x38   : > { %v675_v2 = vld [vmem:[%s571_s15] sm:$0xff]  ;;  %v676_v3 = vld [vmem:[%s571_s15 + $0x8] sm:$0xff]  ;;  %v677_v4 = vld [vmem:[%s571_s15 + $0x10] sm:$0xff]  ;;  %s1943_s19 = sshll.u32 %s548_s16, 3  ;;  %s579_s17 = scalar_lea.vmem %s2118_s7, %s1932_s18 }
  0x39   : > { %v1455_v5 = vpack.c.bf16 %v676_v3, %v675_v2  ;;  %v590_v6 = vld [vmem:[%s563_s30] sm:$0xff]  ;;  %v591_v7 = vld [vmem:[%s563_s30 + $0x8] sm:$0xff]  ;;  %v678_v8 = vld [vmem:[%s571_s15 + $0x18] sm:$0xff]  ;;  %s554_s14 = scalar_lea.vmem %s2162_s1, %s1943_s19  ;;  %s550_s3 = scalar_lea.vmem %s2163_s0, %s1943_s19 }
  0x3a   : > { %v1449_v9 = vpack.c.bf16 %v591_v7, %v590_v6  ;;  %v592_v10 = vld [vmem:[%s563_s30 + $0x10] sm:$0xff]  ;;  %v593_v11 = vld [vmem:[%s563_s30 + $0x18] sm:$0xff]  ;;  %v1458_v12 = vpack.c.bf16 %v678_v8, %v677_v4  ;;  %v588_v14 = vld [vmem:[%s554_s14] sm:$0xff]  ;;  %s566_s15 = scalar_lea.vmem %s2164_s4, %s1924_s24  ;;  %s558_s14 = scalar_lea.vmem %s2165_s2, %s1943_s19 }
  0x3b   : > { %1456 = vmatpush3.bf16.msra.mxu1 %v1455_v5  ;;  %v1452_v13 = vpack.c.bf16 %v593_v11, %v592_v10  ;;  %v587_v15 = vld [vmem:[%s550_s3] sm:$0xff]  ;;  %v760_v25 = vld [vmem:[%s579_s17 + $0x8] sm:$0xff]  ;;  %v761_v26 = vld [vmem:[%s579_s17 + $0x10] sm:$0xff]  ;;  %s1355_s30 = sshll.u32 %s1924_s24, 3  ;;  %s2166_s12 = sld [smem:[#allocation22_spill]] }
  0x3c   : > { %1450 = vmatpush3.bf16.msra.mxu0 %v1449_v9  ;;  %1457 = vmatprep.subr.bf16.mxu1 %v1726_v0  ;;  %v1356_v17 = vld [vmem:[%s566_s15] ss:$0 sm:$0xff]  ;;  %v762_v28 = vld [vmem:[%s579_s17 + $0x18] sm:$0xff]  ;;  %s582_s15 = scalar_lea.vmem %s2119_s8, %s1924_s24  ;;  %s539_s24 = scalar_lea.vmem [#allocation3], %s1920_s11 }
  0x3d   : > { %1451 = vmatprep.subr.bf16.mxu0 %v1726_v0  ;;  %v759_v24 = vld [vmem:[%s579_s17] sm:$0xff]  ;;  %v1464_v29 = vpack.c.bf16 %v762_v28, %v761_v26 }
  0x3e   : > { %v1461_v27 = vpack.c.bf16 %v760_v25, %v759_v24  ;;  %v589_v30 = vld [vmem:[%s558_s14] sm:$0xff]  ;;  %s2134_s14 = sand.u32 1, %s1688_s22  }
  0x3f   : > { %1459 = vmatpush3.bf16.msra.mxu1 %v1458_v12  ;;  %v1360_v41 = vld [vmem:[%s582_s15] ss:$0 sm:$0xff]  ;;  %s2002_s0 = sshll.u32 %s2134_s14, 3 }
  0x40   : > { %1453 = vmatpush3.bf16.msra.mxu0 %v1452_v13  ;;  %1433 = vmatprep.subr.mxu1 %v1728_v1  ;;  %s2135_s18 = scalar_lea.vmem [#allocation5], %s2002_s0 }
  0x41   : > { %1460 = vmatprep.subr.bf16.mxu0 %v1726_v0  ;;  %s586_s3 = scalar_lea.vmem %s2166_s12, %s1355_s30 }
  0x42   : > { %1420 = vmatmul.mubr.msk.f32.vlgmr.msra.gmra.mrb[0].mxu1 %vm601_vm1, %v588_v14  ;;  %v1006_v44 = vld [vmem:[%s586_s3] sm:$0xff] }
  0x43   : > { %1409 = vmatmul.mubr.msk.f32.vlgmr.msra.gmra.mrb[0].mxu0 %vm601_vm1, %v587_v15  ;;  %1435 = vmatprep.mubr.msk.f32.mxu1 %vm1727_vm0, %v1728_v1 }
  0x44   : > { %1430 = vmatprep.mubr.msk.f32.mxu0 %vm1727_vm0, %v1728_v1  ;;  %1462 = vmatpush3.bf16.msra.mxu0 %v1461_v27 }
  0x45   : > { %1463 = vmatprep.subr.bf16.mxu0 %v1726_v0 }
  0x48   : > { %1465 = vmatpush3.bf16.msra.mxu0 %v1464_v29 }
  0x49   : > { %1443 = vmatprep.subr.mxu0 %v1728_v1 }
  0x4b   : > { %1431 = vmatmul.mubr.msk.f32.vlgmr.msra.gmra.mrb[2].mxu0 %vm601_vm1, %v589_v30 }
  0x4c   : > { %1445 = vmatprep.mubr.msk.f32.mxu0 %vm1727_vm0, %v1728_v1  ;;  %1444 = vmatpush3.msra.mxu0 %v1006_v44 }
 0x115   : > { %v755_v18 = vpop.f32.mrb[0].mxu1 }
 0x116   : > { %v756_v19 = vadd.f32 %v1358_v16, %v755_v18  ;;  %v1421_v20 = vpop.f32.mrb[1].mxu1  ;;  %v671_v21 = vpop.f32.mrb[0].mxu0 }
 0x117   : > { %v672_v22 = vadd.f32 %v1356_v17, %v671_v21  ;;  %v1410_v23 = vpop.f32.mrb[1].mxu0 }
 0x118   : > { %1434 = vmatpush3.xpose.msk.msra.mxu1 %vm843_vm2, %v756_v19 }
 0x119   : > { %1438 = vmatprep.subr.mxu1 %v1728_v1 }
 0x11b   : > { %1436 = vmatmul.mubr.msk.f32.vlgmr.msra.gmra.mrb[2].mxu1 %vm843_vm2, %v672_v22 }
 0x11c   : > { %1440 = vmatprep.mubr.msk.f32.mxu1 %vm1727_vm0, %v1728_v1 }
 0x11e   : > { %v839_v40 = vpop.f32.mrb[2].mxu0 }
 0x11f   : > { %v1432_v42 = vpop.f32.mrb[3].mxu0  ;;  %v840_v43 = vadd.f32 %v1360_v41, %v839_v40 }
 0x121   : > { %1439 = vmatpush3.msra.mxu1 %v840_v43 }
 0x1ee   : > { %v916_v31 = vpop.f32.mrb[2].mxu1 }
 0x1ef   : > { %v920_v32 = vmul.f32 0.35355338, %v916_v31  ;;  %v1437_v33 = vpop.f32.mrb[3].mxu1 }
 0x1f1   : > { %v921_v34 = vsel %vm843_vm2, %v920_v32, -inf }
 0x1f2   : > { %922 = vmax.xlane.f32.xlu0 %v921_v34 }
 0x27f   : > { %v923_v35 = vpop.xlane.xlu0 %922 }
 0x280   : > { %v924_v36 = vsub.f32 %v920_v32, %v923_v35 }
 0x282   : > { %v925_v37 = vmul.f32 1.442695, %v924_v36 }
 0x284   : > { %1570 = vpow2.f32 %v925_v37 }
 0x28e   : > { %v1571_v38 = vpop.eup %1570 }
 0x28f   : > { %v927_v39 = vsel %vm843_vm2, %v1571_v38, 0.0 }
 0x290   : > { %928 = vadd.xlane.f32.xlu0 %v927_v39 }
 0x31d   : > { %v929_v45 = vpop.xlane.xlu0 %928 }
 0x31e   : > { %1572 = vrcp.f32 %v929_v45 }
 0x328   : > { %v1573_v46 = vpop.eup %1572 }
 0x329   : > { %v931_v47 = vmul.f32 %v1573_v46, %v1571_v38 }
 0x32b   : > { %932 = vst.msk [vmem:[%s2135_s18] sm:$0xff] %vm843_vm2, %v931_v47  ;;  %1441 = vmatmul.mubr.msk.f32.vlgmr.msra.gmra.mrb[4].mxu1 %vm843_vm2, %v931_v47 }
 0x3fe   : > { %v1002_v48 = vpop.f32.mrb[4].mxu1 }
 0x3ff   : > { %v1442_v49 = vpop.f32.mrb[5].mxu1  ;;  %1446 = vmatmul.mubr.msk.f32.vlgmr.msra.gmra.mrb[4].mxu0 %vm843_vm2, %v1002_v48 }
 0x4cd   : > { %1083 = sbr.rel (%p1366_p6) target bundleno = 1236 (0x4d4), region = 68 }
 0x4d2   : > { %v1076_v50 = vpop.f32.mrb[4].mxu0 }
 0x4d3   : > { %v1447_v51 = vpop.f32.mrb[5].mxu0 }
 0x4d4 PF: > { %v1085_v53 = vld [vmem:[#allocation2] sm:$0xff]  ;;  %p1367_p8 = scmp.ne.s32.totalorder %s1708_s27, 3 }
 0x4d5   : > { %v1086_v54 = vadd.f32 %v1085_v53, %v1076_v50  ;;  %s2167_s30 = sld [smem:[#allocation23_spill]] (!%p1367_p8) }
 0x4d6   : > { %1091 = sbr.rel (%p1367_p8) target bundleno = 1250 (0x4e2), region = 72 }
 0x4d7   : > { %1087 = vst.msk [vmem:[#allocation2] sm:$0xff] %vm601_vm1, %v1086_v54 }
 0x4db   : > { %v1368_v56 = vld [vmem:[%s2167_s30] ss:$0 sm:$0xff] (!%p1367_p8) }
 0x4de   : > { %v1092_v55 = vld [vmem:[#allocation2] sm:$0xff] }
 0x4df   : > { %v1100_v57 = vadd.f32 %v1368_v56, %v1092_v55 }
 0x4e1   : > { %1101 = vst.msk [vmem:[%s539_s24] sm:$0xff] %vm601_vm1, %v1100_v57 }
 0x4e2 PF: > { %s1371_s16 = sshll.u32 %s1712_s28, 7  ;;  %s2169_s3 = sld [smem:[#allocation24_spill]] }
 0x4e3   : > { %s1121_s18 = sshll.u32 %s539_s24, 4  ;;  %s2170_s1 = sand.u32 1, %s1700_s25   ;;  %s1122_s18 = int_to_ptr.vmem [resolvable:$true] %s1121_s18 }
 0x4e4   : > { %s1103_s2 = scalar_lea.sflag [#allocation4], %s2170_s1  ;;  %s1574_s4 = scalar_lea.vmem %s1122_s18, 128 }
 0x4e5   : > { %p1575_p9 = scmp.ne.s32.totalorder %s1122_s18, %s1574_s4  ;;  %s1730_s19 = smov [#allocation3]  }
 0x4e6   : > { %s1578_s15 = sshll.u32 %s1730_s19, 4  ;;  %s1579_s15 = int_to_ptr.vmem [resolvable:$false] %s1578_s15 }
 0x4e7   : > { %p1576_p10 = pnand %p1575_p9, %p1868_p3  ;;  %s1580_s30 = scalar_lea.vmem %s1579_s15, 256 }
 0x4e8   : > { %s2023_s14 = scalar_lea.hbm %s2169_s3, %s1371_s16  ;;  %p1581_p0 = scmp.lt.s32.totalorder %s1122_s18, %s1579_s15 }
 0x4e9   : > { %p1577_p11 = pneg %p1576_p10  ;;  %p1582_p1 = scmp.lt.s32.totalorder %s1580_s30, %s1574_s4 }
 0x4eb   : > { %p1583_p4 = por %p1582_p1, %p1581_p0 }
 0x4ed   : > { %p1584_p2 = pnand %p1583_p4, %p1577_p11 }
 0x4ef   : > { %1587 = shalt.err (!%p1584_p2)
}
 0x4f0   : > { %s1588_s1 = scalar_lea.hbm %s2023_s14, 128  ;;  %s1592_s17 = scalar_lea.hbm %s2169_s3, 256 }
 0x4f1   : > { %p1589_p5 = scmp.ne.s32.totalorder %s2023_s14, %s1588_s1  ;;  %p1593_p9 = scmp.lt.u32.totalorder %s2023_s14, %s2169_s3 }
 0x4f2   : > { %p1594_p10 = scmp.lt.u32.totalorder %s1592_s17, %s1588_s1  ;;  %p1596_p0 = scmp.lt.u32.totalorder %s1588_s1, %s2023_s14 }
 0x4f3   : > { %p1590_p6 = pnand %p1589_p5, %p1868_p3 }
 0x4f4   : > { %p1595_p11 = por %p1594_p10, %p1593_p9 }
 0x4f5   : > { %p1591_p8 = pneg %p1590_p6 }
 0x4f6   : > { %p1597_p1 = por %p1596_p0, %p1595_p11 }
 0x4f8   : > { %p1598_p4 = pnand %p1597_p1, %p1591_p8 }
 0x4fa   : > { %1601 = shalt.err (!%p1598_p4)
}
 0x4fb   : > { %1466 = dma.vmem_to_hbm [thread:$0]  (%p1868_p3), %s1122_s18, 128, %s2023_s14, %s1103_s2  }
 0x4fc   : > { %s1372_s4 = sshll.u32 %s1712_s28, 2  ;;  %s2171_s15 = scalar_lea.vmem [#allocation5], %s2002_s0 }
 0x4fd   : > { %s1136_s30 = sshll.u32 %s2171_s15, 4  ;;  %s1132_s24 = sadd.s32 %s1708_s27, %s1372_s4  ;;  %s2048_s30 = int_to_ptr.vmem [resolvable:$true] %s1136_s30 }
 0x4fe   : > { %s1373_s1 = sshll.u32 %s1132_s24, 7  ;;  %s2172_s11 = sld [smem:[#allocation25_spill]] }
 0x4ff   : > { %s2173_s19 = sand.u32 1, %s1688_s22   ;;  %s1602_s5 = scalar_lea.vmem %s2048_s30, 128 }
 0x500   : > { %s1108_s3 = scalar_lea.sflag [#allocation6], %s2173_s19  ;;  %p1603_p2 = scmp.ne.s32.totalorder %s2048_s30, %s1602_s5 }
 0x501   : > { %s1731_s0 = smov [#allocation5]  }
 0x502   : > { %p1604_p3 = pnand %p1603_p2, %p1897_p12  ;;  %s1606_s2 = sshll.u32 %s1731_s0, 4  ;;  %s1607_s2 = int_to_ptr.vmem [resolvable:$false] %s1606_s2 }
 0x503   : > { %s1608_s27 = scalar_lea.vmem %s1607_s2, 256  ;;  %p1609_p6 = scmp.lt.s32.totalorder %s2048_s30, %s1607_s2 }
 0x504   : > { %s1134_s12 = scalar_lea.hbm %s2172_s11, %s1373_s1  ;;  %p1605_p5 = pneg %p1604_p3 }
 0x505   : > { %p1610_p8 = scmp.lt.s32.totalorder %s1608_s27, %s1602_s5 }
 0x507   : > { %p1611_p9 = por %p1610_p8, %p1609_p6 }
 0x509   : > { %p1612_p10 = pnand %p1611_p9, %p1605_p5 }
 0x50b   : > { %1615 = shalt.err (!%p1612_p10)
}
 0x50c   : > { %s1616_s28 = scalar_lea.hbm %s1134_s12, 128  ;;  %s1620_s4 = scalar_lea.hbm %s2172_s11, 1024 }
 0x50d   : > { %p1617_p11 = scmp.ne.s32.totalorder %s1134_s12, %s1616_s28  ;;  %p1621_p4 = scmp.lt.u32.totalorder %s1134_s12, %s2172_s11 }
 0x50e   : > { %p1622_p2 = scmp.lt.u32.totalorder %s1620_s4, %s1616_s28  ;;  %p1624_p13 = scmp.lt.u32.totalorder %s1616_s28, %s1134_s12 }
 0x50f   : > { %p1618_p0 = pnand %p1617_p11, %p1897_p12 }
 0x510   : > { %p1623_p3 = por %p1622_p2, %p1621_p4 }
 0x511   : > { %p1619_p1 = pneg %p1618_p0 }
 0x512   : > { %p1625_p6 = por %p1624_p13, %p1623_p3 }
 0x514   : > { %p1626_p5 = pnand %p1625_p6, %p1619_p1 }
 0x516   : > { %1629 = shalt.err (!%p1626_p5)
}
 0x517   : > { %1467 = dma.vmem_to_hbm [thread:$0]  (%p1897_p12), %s2048_s30, 128, %s1134_s12, %s1108_s3  }
 0x518 PF: > { %s2174_s5 = sld [smem:[#allocation9_spill]]  ;;  %p1477_p8 = scmp.ge.s32.totalorder %s1724_s13, 2 }
 0x51a   : > { %p1471_p9 = pnand %p1477_p8, %p1885_p7 }
 0x51e   : > { %s1148_s1 = sand.u32 1, %s2174_s5  }
 0x51f   : > { %s1149_s16 = scalar_lea.sflag [#allocation4], %s1148_s1 }
 0x520   : > { %1675 = dma.done.wait (!%p1471_p9), %s1149_s16, 128  }
 0x521   : > { %1677 = vsyncadd (!%p1471_p9), %s1149_s16, 4294967168  ;;  %s1157_s17 = sand.u32 1, %s1684_s21   ;;  %p2175_p13 = scmp.ne.s32.totalorder %s2159_s9, 0 }
 0x522   : > { %s1158_s19 = scalar_lea.sflag [#allocation6], %s1157_s17 }
 0x523   : > { %p1474_p10 = pnand %p1477_p8, %p2175_p13 }
 0x525   : > { %1679 = dma.done.wait (!%p1474_p10), %s1158_s19, 128  }
 0x526   : > { %1681 = vsyncadd (!%p1474_p10), %s1158_s19, 4294967168  ;;  %s29_s13 = sadd.s32 1, %s1724_s13   ;;  %s2176_s10 = sld [smem:[#allocation15_spill]] }
 0x527   : > { %p26_p12 = scmp.ge.s32.totalorder %s29_s13, 10   ;;  %s2177_s27 = sld [smem:[#allocation10_spill]] }
 0x528   : > { %s2178_s28 = sld [smem:[#allocation11_spill]]  ;;  %s2179_s20 = sld [smem:[#allocation12_spill]] }
 0x529   : > { %s2180_s30 = sld [smem:[#allocation14_spill]]  ;;  %s2181_s21 = smov %s1688_s22 }
 0x52a   : > { %s2182_s22 = smov %s1692_s23  ;;  %s2183_s23 = smov %s1905_s29 }
 0x52b   : > { %s2184_s24 = smov %s1700_s25  ;;  %s2185_s25 = smov %s1704_s26 }
 0x52c   : > { %s2186_s26 = smov %s2176_s10  ;;  %28 = sbr.rel (!%p26_p12) target bundleno = 20 (0x14), region = 151 }
 0x52e   : > { %s2187_s29 = smov %s2179_s20 }
 0x533   :  { %1163 = vsyncpa [#allocation4], 1 }
 0x534   :  { %1165 = vsyncpa [#allocation4 + $0x1], 1 }
 0x535   :  { %1166 = vsyncpa [#allocation6], 1 }
 0x536   :  { %1168 = vsyncpa [#allocation6 + $0x1], 1 }

</bundles_post_ra>
